<compile_context>
chip_gen: v7x
topology: tpu7x:2x2x1
jax: 0.10.0
libtpu: 0.0.40
codegen_flags: <defaults>
</compile_context>

<pallas_src>
import jax
import jax.numpy as jnp
from jax.experimental import pallas as pl
from jax.experimental.pallas import tpu as pltpu

HID1, HID2 = 400, 300          # logical hidden sizes (PyTorch module)
HID1_PAD, HID2_PAD = 512, 384  # lane-aligned (multiples of 128) padded sizes

_MIN_SPLIT_ROWS = 1024                 # only force a 2-way split (v7x megacore)
_VMEM_LIMIT_BYTES = 48 * 1024 * 1024   # > v5e/v6e scoped defaults, < v7x physical


def _round_up(n, m):
    return ((n + m - 1) // m) * m


def _cdiv(a, b):
    return -(-a // b)


def _tile_plan(batch, block_b):
    """Balanced batch tiling: tb is a multiple of 16 (bf16 sublane packing),
    chosen so padding waste is < 16 rows and large batches keep >= 2 grid
    steps (so the "parallel" axis can shard across both v7x TensorCores)."""
    block_b = max(16, _round_up(block_b, 16))
    num_steps = max(1, _cdiv(batch, block_b))
    if num_steps == 1 and batch >= 2 * _MIN_SPLIT_ROWS:
        num_steps = 2
    tb = _round_up(_cdiv(batch, num_steps), 16)
    return tb, tb * num_steps, num_steps


def _critic_kernel(xu_ref, w1_ref, w2_ref, w3_ref, out_ref):
    # Layer 1: one merged (tb, 32)@(32, 512) bf16 MXU pass, f32 accumulation.
    # b1 rides on the constant-1 input column; no explicit bias add.
    h1 = jnp.dot(xu_ref[...], w1_ref[...], preferred_element_type=jnp.float32)
    h1 = jnp.maximum(h1, 0.0)

    # Layer 2: (tb, 512)@(512, 384) bf16 MXU pass, f32 accumulation.
    # h1[:, 400] == 1 by construction, so w2 row 400 carries b2.
    h2 = jnp.dot(h1.astype(jnp.bfloat16), w2_ref[...],
                 preferred_element_type=jnp.float32)
    h2 = jnp.maximum(h2, 0.0)

    # Layer 3 (out_features == 1): VPU multiply + lane reduction against a
    # single (1, 384) f32 row. h2[:, 300] == 1 carries b3.
    q = jnp.sum(h2 * w3_ref[...], axis=-1, keepdims=True)
    out_ref[...] = q.astype(out_ref.dtype)


def prepare_critic_params(params):
    """Fold biases / zero-pad / cast the logical f32 params into kernel layout.

    Returns (w1a, w2a, w3a):
      w1a: (F_pad, 512) bf16, F_pad = round_up(state_dim+action_dim+1, 16).
           Row F holds b1 and a 1.0 in column 400 (b2 carrier).
      w2a: (512, 384) bf16. Row 400 holds b2 and a 1.0 in column 300 (b3 carrier).
      w3a: (1, 384) f32.   Columns 0..299 hold w3; column 300 holds b3.
    """
    w1, b1, w2, b2, w3, b3 = params   # w*: (in, out) f32, b*: (1, out) f32
    feat = w1.shape[0]                # state_dim + action_dim
    f_pad = _round_up(feat + 1, 16)

    w1a = jnp.zeros((f_pad, HID1_PAD), jnp.float32)
    w1a = w1a.at[:feat, :HID1].set(w1)
    w1a = w1a.at[feat, :HID1].set(b1[0])    # bias row (matches constant-1 col)
    w1a = w1a.at[feat, HID1].set(1.0)       # -> h1[:, 400] == 1
    w1a = w1a.astype(jnp.bfloat16)

    w2a = jnp.zeros((HID1_PAD, HID2_PAD), jnp.float32)
    w2a = w2a.at[:HID1, :HID2].set(w2)
    w2a = w2a.at[HID1, :HID2].set(b2[0])    # b2 rides on h1[:, 400] == 1
    w2a = w2a.at[HID1, HID2].set(1.0)       # -> h2[:, 300] == 1
    w2a = w2a.astype(jnp.bfloat16)

    w3a = jnp.zeros((1, HID2_PAD), jnp.float32)
    w3a = w3a.at[0, :HID2].set(w3[:, 0])
    w3a = w3a.at[0, HID2].set(b3[0, 0])     # b3 rides on h2[:, 300] == 1
    return (w1a, w2a, w3a)


def critic_forward(x, u, prepared, *, block_b=2048):
    """x: (B, state_dim), u: (B, action_dim). Returns (B, 1) f32."""
    w1a, w2a, w3a = prepared
    B, sd = x.shape
    ad = u.shape[1]
    f_pad = w1a.shape[0]
    assert sd + ad + 1 <= f_pad, "prepared params do not match input widths"

    tb, b_pad, num_steps = _tile_plan(B, block_b)

    # Augmented input [x | u | 1 | 0-pad], bf16. The constant-1 column carries
    # the biases through the MXU; padded batch rows get 0 there, so padded
    # rows produce exactly q == 0 (safe even if the final slice were removed).
    xu = jnp.concatenate(
        [x.astype(jnp.bfloat16), u.astype(jnp.bfloat16),
         jnp.ones((B, 1), jnp.bfloat16)], axis=1)
    xu = jnp.pad(xu, ((0, b_pad - B), (0, f_pad - (sd + ad + 1))))

    def resident(shape):
        # Constant block index -> DMA'd once, VMEM-resident across grid steps.
        return pl.BlockSpec(shape, lambda i: (0, 0))

    out = pl.pallas_call(
        _critic_kernel,
        out_shape=jax.ShapeDtypeStruct((b_pad, 1), jnp.float32),
        grid=(num_steps,),
        in_specs=[
            pl.BlockSpec((tb, f_pad), lambda i: (i, 0)),
            resident(w1a.shape), resident(w2a.shape), resident(w3a.shape),
        ],
        out_specs=pl.BlockSpec((tb, 1), lambda i: (i, 0)),
        compiler_params=pltpu.CompilerParams(
            dimension_semantics=("parallel",),
            vmem_limit_bytes=_VMEM_LIMIT_BYTES),
    )(xu, w1a, w2a, w3a)
    return out[:B]


def init_critic_params(key, state_dim, action_dim):
    """PyTorch nn.Linear-style init (U(-1/sqrt(fan_in), +)), logical f32 shapes."""
    def linear(key, fan_in, fan_out):
        kw, kb = jax.random.split(key)
        bound = 1.0 / jnp.sqrt(fan_in)
        w = jax.random.uniform(kw, (fan_in, fan_out), jnp.float32, -bound, bound)
        b = jax.random.uniform(kb, (1, fan_out), jnp.float32, -bound, bound)
        return w, b

    k1, k2, k3 = jax.random.split(key, 3)
    w1, b1 = linear(k1, state_dim + action_dim, HID1)
    w2, b2 = linear(k2, HID1, HID2)
    w3, b3 = linear(k3, HID2, 1)
    return (w1, b1, w2, b2, w3, b3)


def critic_reference_f32(x, u, params):
    """Pure f32 reference (matches the PyTorch module in full precision)."""
    w1, b1, w2, b2, w3, b3 = params
    xu = jnp.concatenate([x, u], axis=1)
    h1 = jax.nn.relu(xu @ w1 + b1)
    h2 = jax.nn.relu(h1 @ w2 + b2)
    return h2 @ w3 + b3


def critic_reference_bf16(x, u, params):
    """Reference with the same bf16 rounding of inputs/weights/biases/
    activations as the kernel (f32 accumulation), for a tight check."""
    w1, b1, w2, b2, w3, b3 = params
    f = lambda a: a.astype(jnp.bfloat16).astype(jnp.float32)
    xu = jnp.concatenate([f(x), f(u)], axis=1)
    h1 = jax.nn.relu(xu @ f(w1) + f(b1))
    h2 = jax.nn.relu(f(h1) @ f(w2) + f(b2))
    return h2 @ w3 + b3


if __name__ == "__main__":
    state_dim, action_dim, batch = 16, 8, 2
    key = jax.random.PRNGKey(0)
    kp, kx, ku = jax.random.split(key, 3)

    params = init_critic_params(kp, state_dim, action_dim)
    prepared = prepare_critic_params(params)
    x = jax.random.normal(kx, (batch, state_dim), jnp.float32)
    u = jax.random.normal(ku, (batch, action_dim), jnp.float32)

    q = jax.block_until_ready(critic_forward(x, u, prepared))
    q_bf16 = jax.block_until_ready(critic_reference_bf16(x, u, params))
    q_f32 = jax.block_until_ready(critic_reference_f32(x, u, params))

    assert q.shape == (batch, 1), q.shape
    # Tight check against a reference with identical bf16 rounding.
    assert jnp.allclose(q, q_bf16, atol=2e-3, rtol=2e-3), (q, q_bf16)
    # Loose check against the full-precision PyTorch-equivalent reference.
    assert jnp.allclose(q, q_f32, atol=5e-2, rtol=5e-2), (q, q_f32)
    print("KERNEL_OK")
</pallas_src>

<mosaic_0001>
module attributes {stable_mosaic.version = 11 : i64} {
  func.func @_critic_kernel(%arg0: i32, %arg1: memref<16x32xbf16, #tpu.memory_space<vmem>>, %arg2: memref<32x512xbf16, #tpu.memory_space<vmem>>, %arg3: memref<512x384xbf16, #tpu.memory_space<vmem>>, %arg4: memref<1x384xf32, #tpu.memory_space<vmem>>, %arg5: memref<16x1xf32, #tpu.memory_space<vmem>>) attributes {dimension_semantics = [#tpu.dimension_semantics<parallel>], iteration_bounds = array<i64: 1>, scalar_prefetch = 0 : i64, scratch_operands = 0 : i64, tpu.core_type = #tpu.core_type<tc>, window_params = [{transform_indices = @transform_0, window_bounds = array<i64: 16, 32>}, {pipeline_mode = #tpu.pipeline_mode<synchronous>, transform_indices = @transform_1, window_bounds = array<i64: 32, 512>}, {pipeline_mode = #tpu.pipeline_mode<synchronous>, transform_indices = @transform_2, window_bounds = array<i64: 512, 384>}, {pipeline_mode = #tpu.pipeline_mode<synchronous>, transform_indices = @transform_3, window_bounds = array<i64: 1, 384>}, {transform_indices = @transform_4, window_bounds = array<i64: 16, 1>}]} {
    %c0 = arith.constant 0 : index
    %c0_0 = arith.constant 0 : index
    %0 = vector.load %arg1[%c0, %c0_0] : memref<16x32xbf16, #tpu.memory_space<vmem>>, vector<16x32xbf16>
    %c0_1 = arith.constant 0 : index
    %c0_2 = arith.constant 0 : index
    %1 = vector.load %arg2[%c0_1, %c0_2] : memref<32x512xbf16, #tpu.memory_space<vmem>>, vector<32x512xbf16>
    %cst = arith.constant dense<0.000000e+00> : vector<16x512xf32>
    %2 = tpu.matmul %0, %1, %cst {dimension_numbers = #tpu.dot_dimension_numbers<[1], [0], [0], [1], [0, 0, 1, 1], [], []>} : vector<16x32xbf16>, vector<32x512xbf16>, vector<16x512xf32> -> vector<16x512xf32>
    %cst_3 = arith.constant 0.000000e+00 : f32
    %3 = vector.broadcast %cst_3 : f32 to vector<16x512xf32>
    %4 = arith.maximumf %2, %3 : vector<16x512xf32>
    %5 = arith.truncf %4 : vector<16x512xf32> to vector<16x512xbf16>
    %c0_4 = arith.constant 0 : index
    %c0_5 = arith.constant 0 : index
    %6 = vector.load %arg3[%c0_4, %c0_5] : memref<512x384xbf16, #tpu.memory_space<vmem>>, vector<512x384xbf16>
    %cst_6 = arith.constant dense<0.000000e+00> : vector<16x384xf32>
    %7 = tpu.matmul %5, %6, %cst_6 {dimension_numbers = #tpu.dot_dimension_numbers<[1], [0], [0], [1], [0, 0, 1, 1], [], []>} : vector<16x512xbf16>, vector<512x384xbf16>, vector<16x384xf32> -> vector<16x384xf32>
    %cst_7 = arith.constant 0.000000e+00 : f32
    %8 = vector.broadcast %cst_7 : f32 to vector<16x384xf32>
    %9 = arith.maximumf %7, %8 : vector<16x384xf32>
    %c0_8 = arith.constant 0 : index
    %c0_9 = arith.constant 0 : index
    %10 = vector.load %arg4[%c0_8, %c0_9] : memref<1x384xf32, #tpu.memory_space<vmem>>, vector<1x384xf32>
    %11 = vector.broadcast %10 : vector<1x384xf32> to vector<16x384xf32>
    %12 = arith.mulf %9, %11 : vector<16x384xf32>
    %cst_10 = arith.constant dense<0.000000e+00> : vector<16xf32>
    %13 = vector.multi_reduction <add>, %12, %cst_10 [1] : vector<16x384xf32> to vector<16xf32>
    %14 = vector.shape_cast %13 : vector<16xf32> to vector<16x1xf32>
    %c0_11 = arith.constant 0 : index
    %c0_12 = arith.constant 0 : index
    %15 = vector.load %arg5[%c0_11, %c0_12] : memref<16x1xf32, #tpu.memory_space<vmem>>, vector<16x1xf32>
    tpu.vector_store %arg5[%c0_11, %c0_12], %14 {strides = array<i32>} : memref<16x1xf32, #tpu.memory_space<vmem>>, vector<16x1xf32>,
    return
  }
  func.func @transform_0(%arg0: i32) -> (i32, i32) {
    %c0_i32 = arith.constant 0 : i32
    %c0_i32_0 = arith.constant 0 : i32
    return %arg0, %c0_i32 : i32, i32
  }
  func.func @transform_1(%arg0: i32) -> (i32, i32) {
    %c0_i32 = arith.constant 0 : i32
    %c0_i32_0 = arith.constant 0 : i32
    %c0_i32_1 = arith.constant 0 : i32
    return %c0_i32, %c0_i32_0 : i32, i32
  }
  func.func @transform_2(%arg0: i32) -> (i32, i32) {
    %c0_i32 = arith.constant 0 : i32
    %c0_i32_0 = arith.constant 0 : i32
    %c0_i32_1 = arith.constant 0 : i32
    return %c0_i32, %c0_i32_0 : i32, i32
  }
  func.func @transform_3(%arg0: i32) -> (i32, i32) {
    %c0_i32 = arith.constant 0 : i32
    %c0_i32_0 = arith.constant 0 : i32
    %c0_i32_1 = arith.constant 0 : i32
    return %c0_i32, %c0_i32_0 : i32, i32
  }
  func.func @transform_4(%arg0: i32) -> (i32, i32) {
    %c0_i32 = arith.constant 0 : i32
    %c0_i32_0 = arith.constant 0 : i32
    return %arg0, %c0_i32 : i32, i32
  }
}

</mosaic_0001>

<bundles_post_ra>
// kernel: tpu_custom_call.1
= control target key start
LH: loop header
LB: loop body
LE: loop exit
PB: predicated region body
PF: predicated region fallthrough
CT: control target
= control target key end

     0   :  { %9 = vsyncpa [#allocation3], 0  ;;  %s1532_s0 = inlined_call_operand.hbm [shape: bf16[16,32], index: 0, kind: input, shape index: {}]   ;;  %s1533_s1 = inlined_call_operand.hbm [shape: bf16[32,512], index: 1, kind: input, shape index: {}]   ;;  %s1534_s2 = inlined_call_operand.hbm [shape: bf16[512,384], index: 2, kind: input, shape index: {}]   ;;  %s1535_s3 = inlined_call_operand.vmem [shape: f32[1,384], index: 3, kind: input, shape index: {}]   ;;  %s1536_s4 = inlined_call_operand.vmem [shape: f32[16,1], index: 4, kind: output, shape index: {}]  }
   0x1   :  { %10 = vsyncpa [#allocation5], 0  ;;  %s1446_s15 = smov [#allocation4]   ;;  %s1376_s19 = scalar_lea.hbm %s1533_s1, 1024 }
   0x2   :  { %s28_s16 = sshll.u32 %s1446_s15, 4  ;;  %p1377_p0 = scmp.ne.s32.totalorder %s1533_s1, %s1376_s19  ;;  %s29_s16 = int_to_ptr.vmem [resolvable:$true] %s28_s16 }
   0x3   :  { %p1380_p1 = scmp.lt.u32.totalorder %s1376_s19, %s1533_s1 }
   0x5   :  { %p1382_p2 = pnand %p1380_p1, %p1377_p0 }
   0x7   :  { %1385 = shalt.err (!%p1382_p2)
}
   0x8   :  { %s1386_s24 = scalar_lea.vmem %s29_s16, 1024  ;;  %p1391_p4 = scmp.lt.s32.totalorder %s29_s16, %s29_s16 }
   0x9   :  { %p1387_p3 = scmp.ne.s32.totalorder %s29_s16, %s1386_s24  ;;  %p1392_p5 = scmp.lt.s32.totalorder %s1386_s24, %s1386_s24 }
   0xb   :  { %p1393_p6 = por %p1392_p5, %p1391_p4 }
   0xd   :  { %p1394_p7 = pnand %p1393_p6, %p1387_p3 }
   0xf   :  { %1397 = shalt.err (!%p1394_p7)
}
  0x10   :  { %s1447_s25 = smov 256   ;;  %s1448_s26 = smov 16  }
  0x11   :  { %34 = dma.hbm_to_vmem [thread:$0]  %s1533_s1, 1024, %s29_s16, [#allocation5], %s1447_s25, %s1447_s25, %s1448_s26  }
  0x12   :  { %s1449_s29 = smov [#allocation2]   ;;  %s1398_s7 = scalar_lea.hbm %s1532_s0, 128 }
  0x13   :  { %s16_s30 = sshll.u32 %s1449_s29, 4  ;;  %p1399_p8 = scmp.ne.s32.totalorder %s1532_s0, %s1398_s7  ;;  %s17_s30 = int_to_ptr.vmem [resolvable:$true] %s16_s30 }
  0x14   :  { %p1402_p9 = scmp.lt.u32.totalorder %s1398_s7, %s1532_s0 }
  0x16   :  { %p1404_p10 = pnand %p1402_p9, %p1399_p8 }
  0x18   :  { %1407 = shalt.err (!%p1404_p10)
}
  0x19   :  { %s1408_s12 = scalar_lea.vmem %s17_s30, 128  ;;  %p1413_p12 = scmp.lt.s32.totalorder %s17_s30, %s17_s30 }
  0x1a   :  { %p1409_p11 = scmp.ne.s32.totalorder %s17_s30, %s1408_s12  ;;  %p1414_p13 = scmp.lt.s32.totalorder %s1408_s12, %s1408_s12 }
  0x1c   :  { %p1415_p0 = por %p1414_p13, %p1413_p12 }
  0x1e   :  { %p1416_p1 = pnand %p1415_p0, %p1409_p11 }
  0x20   :  { %1419 = shalt.err (!%p1416_p1)
}
  0x21   :  { %s1450_s1 = smov 64   ;;  %s1451_s13 = smov 4  }
  0x22   :  { %22 = dma.hbm_to_vmem [thread:$0]  %s1532_s0, 128, %s17_s30, [#allocation3], %s1450_s1, %s1450_s1, %s1451_s13  }
  0x23   :  { %s1452_s16 = smov [#allocation6]   ;;  %s1420_s20 = scalar_lea.hbm %s1534_s2, 12288 }
  0x24   :  { %s40_s17 = sshll.u32 %s1452_s16, 4  ;;  %p1421_p2 = scmp.ne.s32.totalorder %s1534_s2, %s1420_s20  ;;  %s41_s17 = int_to_ptr.vmem [resolvable:$true] %s40_s17 }
  0x25   :  { %p1424_p3 = scmp.lt.u32.totalorder %s1420_s20, %s1534_s2 }
  0x27   :  { %p1426_p4 = pnand %p1424_p3, %p1421_p2 }
  0x29   :  { %1429 = shalt.err (!%p1426_p4)
}
  0x2a   :  { %s1430_s25 = scalar_lea.vmem %s41_s17, 12288  ;;  %p1435_p6 = scmp.lt.s32.totalorder %s41_s17, %s41_s17 }
  0x2b   :  { %p1431_p5 = scmp.ne.s32.totalorder %s41_s17, %s1430_s25  ;;  %p1436_p7 = scmp.lt.s32.totalorder %s1430_s25, %s1430_s25 }
  0x2d   :  { %p1437_p8 = por %p1436_p7, %p1435_p6 }
  0x2f   :  { %p1438_p9 = pnand %p1437_p8, %p1431_p5 }
  0x31   :  { %1441 = shalt.err (!%p1438_p9)
}
  0x32   :  { %s1453_s0 = smov 192   ;;  %s1454_s26 = smov 12  }
  0x33   :  { %46 = dma.hbm_to_vmem [thread:$0]  %s1534_s2, 12288, %s41_s17, [#allocation5], %s1453_s0, %s1453_s0, %s1454_s26  }
  0x34   :  { %1442 = dma.done.wait [#allocation3], 128  }
  0x35   :  { %1443 = vsyncadd [#allocation3], 4294967168 }
  0x36   :  { %1444 = dma.done.wait [#allocation5], 13312  }
  0x37   :  { %1445 = vsyncadd [#allocation5], 4294953984  ;;  %v1455_v0 = vmov 0   ;;  %v1235_v1 = vld [vmem:[#allocation4 + $0x4] ss:$16 sps:$4 sm:$0xff]   ;;  %v1241_v6 = vld [vmem:[#allocation2] sm:$0xff]  }
  0x38   :  { %150 = vmatprep.mubr.bf16.mxu1 %v1455_v0  ;;  %v1237_v2 = vld [vmem:[#allocation4] ss:$16 sps:$4 sm:$0xff]   ;;  %118 = vmatprep.subr.bf16.mxu1 %v1235_v1  ;;  %v1238_v3 = vld [vmem:[#allocation4 + $0x24] ss:$16 sps:$4 sm:$0xff]   ;;  %v1244_v5 = vld [vmem:[#allocation4 + $0xc] ss:$16 sps:$4 sm:$0xff]  }
  0x39   :  { %119 = vmatpush1.bf16.msra.mxu1 %v1237_v2  ;;  %v1240_v4 = vld [vmem:[#allocation4 + $0x20] ss:$16 sps:$4 sm:$0xff]   ;;  %v1242_v7 = vld [vmem:[#allocation4 + $0x8] ss:$16 sps:$4 sm:$0xff]   ;;  %vm114_vm0 = vcmask 261120   ;;  %vm1061_vm1 = vcmask 7168  }
  0x3a   :  { %120 = vmatprep.subr.bf16.mxu1 %v1238_v3  ;;  %v1248_v8 = vld [vmem:[#allocation6 + $0x4] ss:$12 sps:$4 sm:$0xff]   ;;  %v1250_v9 = vld [vmem:[#allocation6] ss:$12 sps:$4 sm:$0xff]   ;;  %v1251_v11 = vld [vmem:[#allocation6 + $0x1c] ss:$12 sps:$4 sm:$0xff]  }
  0x3b   :  { %v1247_v10 = vld [vmem:[#allocation4 + $0x2c] ss:$16 sps:$4 sm:$0xff]   ;;  %856 = vmatprep.subr.bf16.mxu0 %v1248_v8  ;;  %v1253_v12 = vld [vmem:[#allocation6 + $0x18] ss:$12 sps:$4 sm:$0xff]   ;;  %v1254_v14 = vld [vmem:[#allocation6 + $0x34] ss:$12 sps:$4 sm:$0xff]  }
  0x3c   :  { %857 = vmatpush1.bf16.msra.mxu0 %v1250_v9  ;;  %v1245_v13 = vld [vmem:[#allocation4 + $0x28] ss:$16 sps:$4 sm:$0xff]   ;;  %v1256_v15 = vld [vmem:[#allocation6 + $0x30] ss:$12 sps:$4 sm:$0xff]   ;;  %v1262_v21 = vld [vmem:[#allocation6 + $0x60] ss:$12 sps:$4 sm:$0xff]  }
  0x3d   :  { %121 = vmatpush1.bf16.msra.mxu1 %v1240_v4  ;;  %858 = vmatprep.subr.bf16.mxu0 %v1251_v11  ;;  %v1257_v16 = vld [vmem:[#allocation6 + $0x4c] ss:$12 sps:$4 sm:$0xff]   ;;  %v1259_v17 = vld [vmem:[#allocation6 + $0x48] ss:$12 sps:$4 sm:$0xff]   ;;  %v1260_v19 = vld [vmem:[#allocation6 + $0x64] ss:$12 sps:$4 sm:$0xff]  }
  0x3e   :  { %161 = vmatprep.subr.bf16.mxu1 %v1244_v5  ;;  %v1274_v18 = vld [vmem:[#allocation6 + $0xc8] ss:$12 sps:$4 sm:$0xff]   ;;  %v1279_v23 = vld [vmem:[#allocation6 + $0xe0] ss:$12 sps:$4 sm:$0xff]   ;;  %v1265_v25 = vld [vmem:[#allocation6 + $0x78] ss:$12 sps:$4 sm:$0xff]  }
  0x3f   :  { %v1276_v20 = vld [vmem:[#allocation6 + $0x8] ss:$12 sps:$4 sm:$0xff]   ;;  %v1281_v24 = vld [vmem:[#allocation6 + $0x20] ss:$12 sps:$4 sm:$0xff]   ;;  %v1284_v26 = vld [vmem:[#allocation6 + $0xf8] ss:$12 sps:$4 sm:$0xff]  }
  0x40   :  { %1079 = vmatmul.mubr.msk.bf16.vlgmr.msra.gmra.mrb[0].mxu1 %vm114_vm0, %v1241_v6  ;;  %859 = vmatpush1.bf16.msra.mxu0 %v1253_v12  ;;  %v1263_v22 = vld [vmem:[#allocation6 + $0x7c] ss:$12 sps:$4 sm:$0xff]   ;;  %v1286_v27 = vld [vmem:[#allocation6 + $0x38] ss:$12 sps:$4 sm:$0xff]   ;;  %v1266_v28 = vld [vmem:[#allocation6 + $0x94] ss:$12 sps:$4 sm:$0xff]  }
  0x41   :  { %162 = vmatpush1.bf16.msra.mxu1 %v1242_v7  ;;  %193 = vmatprep.mubr.bf16.mxu1 %v1455_v0  ;;  %v1289_v29 = vld [vmem:[#allocation6 + $0x110] ss:$12 sps:$4 sm:$0xff]   ;;  %v1269_v32 = vld [vmem:[#allocation6 + $0xac] ss:$12 sps:$4 sm:$0xff]   ;;  %v1294_v33 = vld [vmem:[#allocation6 + $0x128] ss:$12 sps:$4 sm:$0xff]  }
  0x42   :  { %163 = vmatprep.subr.bf16.mxu1 %v1247_v10  ;;  %860 = vmatprep.subr.bf16.mxu0 %v1254_v14  ;;  %v1268_v30 = vld [vmem:[#allocation6 + $0x90] ss:$12 sps:$4 sm:$0xff]   ;;  %v1271_v34 = vld [vmem:[#allocation6 + $0xa8] ss:$12 sps:$4 sm:$0xff]   ;;  %v1299_v37 = vld [vmem:[#allocation6 + $0x140] ss:$12 sps:$4 sm:$0xff]  }
  0x43   :  { %v1291_v31 = vld [vmem:[#allocation6 + $0x50] ss:$12 sps:$4 sm:$0xff]   ;;  %v1296_v35 = vld [vmem:[#allocation6 + $0x68] ss:$12 sps:$4 sm:$0xff]   ;;  %v1275_v38 = vld [vmem:[#allocation6 + $0xc0] ss:$12 sps:$4 sm:$0xff]  }
  0x44   :  { %861 = vmatpush1.bf16.msra.mxu0 %v1256_v15  ;;  %v1272_v36 = vld [vmem:[#allocation6 + $0xc4] ss:$12 sps:$4 sm:$0xff]   ;;  %v1301_v39 = vld [vmem:[#allocation6 + $0x80] ss:$12 sps:$4 sm:$0xff]   ;;  %v1277_v40 = vld [vmem:[#allocation6 + $0xdc] ss:$12 sps:$4 sm:$0xff]  }
  0x45   :  { %164 = vmatpush1.bf16.msra.mxu1 %v1245_v13  ;;  %862 = vmatprep.subr.bf16.mxu0 %v1257_v16  ;;  %v1280_v41 = vld [vmem:[#allocation6 + $0xd8] ss:$12 sps:$4 sm:$0xff]   ;;  %v1282_v42 = vld [vmem:[#allocation6 + $0xf4] ss:$12 sps:$4 sm:$0xff]   ;;  %v1285_v43 = vld [vmem:[#allocation6 + $0xf0] ss:$12 sps:$4 sm:$0xff]  }
  0x46   :  { %1177 = vmatprep.subr.bf16.mxu1 %v1274_v18  ;;  %v1287_v44 = vld [vmem:[#allocation6 + $0x10c] ss:$12 sps:$4 sm:$0xff]   ;;  %v1290_v45 = vld [vmem:[#allocation6 + $0x108] ss:$12 sps:$4 sm:$0xff]   ;;  %v1292_v46 = vld [vmem:[#allocation6 + $0x124] ss:$12 sps:$4 sm:$0xff]  }
  0x47   :  { %v1295_v47 = vld [vmem:[#allocation6 + $0x120] ss:$12 sps:$4 sm:$0xff]   ;;  %v1297_v48 = vld [vmem:[#allocation6 + $0x13c] ss:$12 sps:$4 sm:$0xff]   ;;  %v1300_v49 = vld [vmem:[#allocation6 + $0x138] ss:$12 sps:$4 sm:$0xff]  }
  0x48   :  { %1080 = vmatmul.mubr.msk.bf16.vlgmr.msra.gmra.mrb[4].mxu1 %vm114_vm0, %v1241_v6  ;;  %863 = vmatpush1.bf16.msra.mxu0 %v1259_v17  ;;  %v1302_v50 = vld [vmem:[#allocation6 + $0x154] ss:$12 sps:$4 sm:$0xff]   ;;  %v1304_v51 = vld [vmem:[#allocation6 + $0x158] ss:$12 sps:$4 sm:$0xff]   ;;  %v1305_v52 = vld [vmem:[#allocation6 + $0x150] ss:$12 sps:$4 sm:$0xff]  }
  0x49   :  { %1178 = vmatpush3.bf16.msra.mxu1 %v1276_v20  ;;  %864 = vmatprep.subr.bf16.mxu0 %v1260_v19  ;;  %v1306_v53 = vld [vmem:[#allocation6 + $0x98] ss:$12 sps:$4 sm:$0xff]   ;;  %v1309_v55 = vld [vmem:[#allocation6 + $0x170] ss:$12 sps:$4 sm:$0xff]   ;;  %v1310_v56 = vld [vmem:[#allocation6 + $0x168] ss:$12 sps:$4 sm:$0xff]  }
  0x4a   :  { %1179 = vmatprep.subr.bf16.mxu1 %v1279_v23  ;;  %v1307_v54 = vld [vmem:[#allocation6 + $0x16c] ss:$12 sps:$4 sm:$0xff]   ;;  %v1311_v57 = vld [vmem:[#allocation6 + $0xb0] ss:$12 sps:$4 sm:$0xff]   ;;  %v1315_v59 = vld [vmem:[#allocation6 + $0x248] ss:$12 sps:$4 sm:$0xff]  }
  0x4b   :  { %v1314_v58 = vld [vmem:[#allocation6 + $0x184] ss:$12 sps:$4 sm:$0xff]   ;;  %v1312_v6 = vld [vmem:[#allocation6 + $0x180] ss:$12 sps:$4 sm:$0xff]   ;;  %v1316_v7 = vld [vmem:[#allocation6 + $0x188] ss:$12 sps:$4 sm:$0xff]  }
  0x4c   :  { %865 = vmatpush1.bf16.msra.mxu0 %v1262_v21  ;;  %v1319_v8 = vld [vmem:[#allocation6 + $0x19c] ss:$12 sps:$4 sm:$0xff]   ;;  %v1320_v9 = vld [vmem:[#allocation6 + $0x260] ss:$12 sps:$4 sm:$0xff]   ;;  %v1317_v13 = vld [vmem:[#allocation6 + $0x198] ss:$12 sps:$4 sm:$0xff]  }
  0x4d   :  { %1180 = vmatpush3.bf16.msra.mxu1 %v1281_v24  ;;  %866 = vmatprep.subr.bf16.mxu0 %v1263_v22  ;;  %v1321_v14 = vld [vmem:[#allocation6 + $0x1a0] ss:$12 sps:$4 sm:$0xff]   ;;  %v1325_v18 = vld [vmem:[#allocation6 + $0x278] ss:$12 sps:$4 sm:$0xff]   ;;  %v1322_v23 = vld [vmem:[#allocation6 + $0x1b0] ss:$12 sps:$4 sm:$0xff]  }
  0x4e   :  { %1181 = vmatprep.subr.bf16.mxu1 %v1284_v26  ;;  %v1324_v17 = vld [vmem:[#allocation6 + $0x1b4] ss:$12 sps:$4 sm:$0xff]   ;;  %v1326_v24 = vld [vmem:[#allocation6 + $0x1b8] ss:$12 sps:$4 sm:$0xff]  }
  0x4f   :  { %v1329_v26 = vld [vmem:[#allocation6 + $0x1cc] ss:$12 sps:$4 sm:$0xff]  }
  0x50   :  { %867 = vmatpush1.bf16.msra.mxu0 %v1265_v25 }
  0x51   :  { %1182 = vmatpush3.bf16.msra.mxu1 %v1286_v27  ;;  %868 = vmatprep.subr.bf16.mxu0 %v1266_v28  ;;  %v1330_v27 = vld [vmem:[#allocation6 + $0x290] ss:$12 sps:$4 sm:$0xff]   ;;  %v1327_v28 = vld [vmem:[#allocation6 + $0x1c8] ss:$12 sps:$4 sm:$0xff]  }
  0x52   :  { %1183 = vmatprep.subr.bf16.mxu1 %v1289_v29  ;;  %v1331_v29 = vld [vmem:[#allocation6 + $0x1d0] ss:$12 sps:$4 sm:$0xff]  }
  0x54   :  { %869 = vmatpush1.bf16.msra.mxu0 %v1268_v30  ;;  %v1334_v30 = vld [vmem:[#allocation6 + $0x1e4] ss:$12 sps:$4 sm:$0xff]  }
  0x55   :  { %1184 = vmatpush3.bf16.msra.mxu1 %v1291_v31  ;;  %870 = vmatprep.subr.bf16.mxu0 %v1269_v32  ;;  %v1335_v31 = vld [vmem:[#allocation6 + $0x2a8] ss:$12 sps:$4 sm:$0xff]   ;;  %v1332_v32 = vld [vmem:[#allocation6 + $0x1e0] ss:$12 sps:$4 sm:$0xff]  }
  0x56   :  { %1185 = vmatprep.subr.bf16.mxu1 %v1294_v33  ;;  %v1336_v33 = vld [vmem:[#allocation6 + $0x1e8] ss:$12 sps:$4 sm:$0xff]  }
  0x58   :  { %871 = vmatpush1.bf16.msra.mxu0 %v1271_v34  ;;  %v1339_v34 = vld [vmem:[#allocation6 + $0x1fc] ss:$12 sps:$4 sm:$0xff]  }
  0x59   :  { %1186 = vmatpush3.bf16.msra.mxu1 %v1296_v35  ;;  %872 = vmatprep.subr.bf16.mxu0 %v1272_v36  ;;  %v1340_v35 = vld [vmem:[#allocation6 + $0x2c0] ss:$12 sps:$4 sm:$0xff]   ;;  %v1337_v36 = vld [vmem:[#allocation6 + $0x1f8] ss:$12 sps:$4 sm:$0xff]  }
  0x5a   :  { %1187 = vmatprep.subr.bf16.mxu1 %v1299_v37  ;;  %v1341_v37 = vld [vmem:[#allocation6 + $0x200] ss:$12 sps:$4 sm:$0xff]  }
  0x5c   :  { %873 = vmatpush1.bf16.msra.mxu0 %v1275_v38  ;;  %v1344_v38 = vld [vmem:[#allocation6 + $0x214] ss:$12 sps:$4 sm:$0xff]  }
  0x5d   :  { %1188 = vmatpush3.bf16.msra.mxu1 %v1301_v39  ;;  %874 = vmatprep.subr.bf16.mxu0 %v1277_v40  ;;  %v1345_v39 = vld [vmem:[#allocation6 + $0x2d8] ss:$12 sps:$4 sm:$0xff]   ;;  %v1342_v40 = vld [vmem:[#allocation6 + $0x210] ss:$12 sps:$4 sm:$0xff]  }
  0x5e   :  { %1189 = vmatprep.subr.bf16.mxu1 %v1304_v51  ;;  %v1358_v51 = vld [vmem:[#allocation6 + $0x270] ss:$12 sps:$4 sm:$0xff]  }
  0x60   :  { %875 = vmatpush1.bf16.msra.mxu0 %v1280_v41  ;;  %v1346_v41 = vld [vmem:[#allocation6 + $0x218] ss:$12 sps:$4 sm:$0xff]  }
  0x61   :  { %876 = vmatprep.subr.bf16.mxu0 %v1282_v42  ;;  %1190 = vmatpush3.bf16.msra.mxu1 %v1306_v53  ;;  %v1349_v42 = vld [vmem:[#allocation6 + $0x22c] ss:$12 sps:$4 sm:$0xff]   ;;  %v1361_v53 = vld [vmem:[#allocation6 + $0x288] ss:$12 sps:$4 sm:$0xff]  }
  0x62   :  { %1191 = vmatprep.subr.bf16.mxu1 %v1309_v55  ;;  %v1364_v55 = vld [vmem:[#allocation6 + $0x2a0] ss:$12 sps:$4 sm:$0xff]  }
  0x64   :  { %877 = vmatpush1.bf16.msra.mxu0 %v1285_v43  ;;  %v1350_v43 = vld [vmem:[#allocation6 + $0x2f0] ss:$12 sps:$4 sm:$0xff]  }
  0x65   :  { %878 = vmatprep.subr.bf16.mxu0 %v1287_v44  ;;  %1192 = vmatpush3.bf16.msra.mxu1 %v1311_v57  ;;  %v1347_v44 = vld [vmem:[#allocation6 + $0x228] ss:$12 sps:$4 sm:$0xff]   ;;  %v1367_v57 = vld [vmem:[#allocation6 + $0x2b8] ss:$12 sps:$4 sm:$0xff]  }
  0x66   :  { %1199 = vmatprep.subr.bf16.mxu1 %v1315_v59  ;;  %v1370_v59 = vld [vmem:[#allocation6 + $0x2d0] ss:$12 sps:$4 sm:$0xff]  }
  0x68   :  { %879 = vmatpush1.bf16.msra.mxu0 %v1290_v45  ;;  %v1351_v45 = vld [vmem:[#allocation6 + $0x230] ss:$12 sps:$4 sm:$0xff]  }
  0x69   :  { %880 = vmatprep.subr.bf16.mxu0 %v1292_v46  ;;  %v1354_v46 = vld [vmem:[#allocation6 + $0x244] ss:$12 sps:$4 sm:$0xff]  }
  0x6c   :  { %881 = vmatpush1.bf16.msra.mxu0 %v1295_v47  ;;  %v1352_v47 = vld [vmem:[#allocation6 + $0x240] ss:$12 sps:$4 sm:$0xff]  }
  0x6d   :  { %882 = vmatprep.subr.bf16.mxu0 %v1297_v48  ;;  %v1357_v48 = vld [vmem:[#allocation6 + $0x25c] ss:$12 sps:$4 sm:$0xff]  }
  0x70   :  { %883 = vmatpush1.bf16.msra.mxu0 %v1300_v49  ;;  %v1355_v49 = vld [vmem:[#allocation6 + $0x258] ss:$12 sps:$4 sm:$0xff]  }
  0x71   :  { %884 = vmatprep.subr.bf16.mxu0 %v1302_v50  ;;  %v1360_v50 = vld [vmem:[#allocation6 + $0x274] ss:$12 sps:$4 sm:$0xff]  }
  0x74   :  { %885 = vmatpush1.bf16.msra.mxu0 %v1305_v52  ;;  %v1363_v52 = vld [vmem:[#allocation6 + $0x28c] ss:$12 sps:$4 sm:$0xff]  }
  0x75   :  { %886 = vmatprep.subr.bf16.mxu0 %v1307_v54  ;;  %v1366_v54 = vld [vmem:[#allocation6 + $0x2a4] ss:$12 sps:$4 sm:$0xff]  }
  0x78   :  { %887 = vmatpush1.bf16.msra.mxu0 %v1310_v56  ;;  %v1369_v56 = vld [vmem:[#allocation6 + $0x2bc] ss:$12 sps:$4 sm:$0xff]  }
  0x79   :  { %899 = vmatprep.subr.bf16.mxu0 %v1314_v58  ;;  %v1372_v58 = vld [vmem:[#allocation6 + $0x2d4] ss:$12 sps:$4 sm:$0xff]  }
 0x113   :  { %v152_v60 = vpop.f32.mrb[0].mxu1 }
 0x114   :  { %v154_v61 = vpop.f32.mrb[1].mxu1  ;;  %v204_v63 = vmax.f32 %v152_v60, 0.0  ;;  %v1375_v60 = vld [vmem:[#allocation6 + $0x2ec] ss:$12 sps:$4 sm:$0xff]  }
 0x115   :  { %v156_v62 = vpop.f32.mrb[2].mxu1  ;;  %v205_v2 = vmax.f32 %v154_v61, 0.0  ;;  %v1373_v61 = vld [vmem:[#allocation6 + $0x2e8] ss:$12 sps:$4 sm:$0xff]  }
 0x116   :  { %v208_v0 = vmax.f32 %v156_v62, 0.0  ;;  %v158_v1 = vpop.f32.mrb[3].mxu1 }
 0x117   :  { %v209_v3 = vmax.f32 %v158_v1, 0.0 }
 0x118   :  { %v212_v4 = vpack.c.bf16 %v208_v0, %v204_v63 }
 0x119   :  { %v213_v5 = vpack.c.bf16 %v209_v3, %v205_v2 }
 0x11b   :  { %888 = vmatprep.mubr.bf16.mxu0 %v213_v5  ;;  %974 = vmatprep.mubr.bf16.mxu1 %v213_v5  ;;  %v195_v10 = vpop.f32.mrb[4].mxu1 }
 0x11c   :  { %889 = vmatmul.mubr.bf16.vlgmr.msra.gmra.mrb[0].mxu0 %v212_v4  ;;  %975 = vmatmul.mubr.bf16.vlgmr.msra.gmra.mrb[8].mxu1 %v212_v4  ;;  %v206_v11 = vmax.f32 %v195_v10, 0.0  ;;  %v197_v12 = vpop.f32.mrb[5].mxu1 }
 0x11d   :  { %900 = vmatpush1.bf16.msra.mxu0 %v1312_v6  ;;  %1200 = vmatpush3.bf16.msra.mxu1 %v1316_v7  ;;  %v207_v15 = vmax.f32 %v197_v12, 0.0  ;;  %v199_v16 = vpop.f32.mrb[6].mxu1  ;;  %v1032_v12 = vlaneseq }
 0x11e   :  { %901 = vmatprep.subr.bf16.mxu0 %v1319_v8  ;;  %1201 = vmatprep.subr.bf16.mxu1 %v1320_v9  ;;  %v210_v19 = vmax.f32 %v199_v16, 0.0  ;;  %v201_v20 = vpop.f32.mrb[7].mxu1  ;;  %v1030_v16 = vld [vmem:[%s1535_s3] sm:$0x7] }
 0x11f   :  { %v211_v21 = vmax.f32 %v201_v20, 0.0 }
 0x120   :  { %v1519_v22 = vpack.c.bf16 %v210_v19, %v206_v11 }
 0x121   :  { %902 = vmatpush1.bf16.msra.mxu0 %v1317_v13  ;;  %1202 = vmatpush3.bf16.msra.mxu1 %v1321_v14  ;;  %v215_v25 = vpack.c.bf16 %v211_v21, %v207_v15  ;;  %v1033_v13 = vshrl.u32 %v1032_v12, 7 }
 0x122   :  { %903 = vmatprep.subr.bf16.mxu0 %v1324_v17  ;;  %1203 = vmatprep.subr.bf16.mxu1 %v1325_v18 }
 0x123   :  { %1015 = vmatprep.mubr.bf16.mxu1 %v215_v25  ;;  %931 = vmatprep.mubr.bf16.mxu0 %v215_v25  ;;  %v1034_v14 = vsub.s32 0, %v1033_v13  ;;  %v1038_v15 = vsub.s32 1, %v1033_v13  ;;  %v1042_v17 = vsub.s32 2, %v1033_v13 }
 0x125   :  { %904 = vmatpush1.bf16.msra.mxu0 %v1322_v23  ;;  %1204 = vmatpush3.bf16.msra.mxu1 %v1326_v24  ;;  %v1035_v18 = vrot.slane %v1030_v16, %v1034_v14  ;;  %v1039_v20 = vrot.slane %v1030_v16, %v1038_v15 }
 0x126   :  { %905 = vmatprep.subr.bf16.mxu0 %v1329_v26  ;;  %1205 = vmatprep.subr.bf16.mxu1 %v1330_v27  ;;  %v1043_v26 = vrot.slane %v1030_v16, %v1042_v17 }
 0x129   :  { %906 = vmatpush1.bf16.msra.mxu0 %v1327_v28  ;;  %1206 = vmatpush3.bf16.msra.mxu1 %v1331_v29 }
 0x12a   :  { %907 = vmatprep.subr.bf16.mxu0 %v1334_v30  ;;  %1207 = vmatprep.subr.bf16.mxu1 %v1335_v31 }
 0x12d   :  { %908 = vmatpush1.bf16.msra.mxu0 %v1332_v32  ;;  %1208 = vmatpush3.bf16.msra.mxu1 %v1336_v33 }
 0x12e   :  { %909 = vmatprep.subr.bf16.mxu0 %v1339_v34  ;;  %1209 = vmatprep.subr.bf16.mxu1 %v1340_v35 }
 0x131   :  { %910 = vmatpush1.bf16.msra.mxu0 %v1337_v36  ;;  %1210 = vmatpush3.bf16.msra.mxu1 %v1341_v37 }
 0x132   :  { %911 = vmatprep.subr.bf16.mxu0 %v1344_v38  ;;  %1211 = vmatprep.subr.bf16.mxu1 %v1345_v39 }
 0x135   :  { %912 = vmatpush1.bf16.msra.mxu0 %v1342_v40  ;;  %1212 = vmatpush3.bf16.msra.mxu1 %v1346_v41 }
 0x136   :  { %913 = vmatprep.subr.bf16.mxu0 %v1349_v42  ;;  %1213 = vmatprep.subr.bf16.mxu1 %v1350_v43 }
 0x139   :  { %914 = vmatpush1.bf16.msra.mxu0 %v1347_v44  ;;  %1214 = vmatpush3.bf16.msra.mxu1 %v1351_v45 }
 0x13a   :  { %915 = vmatprep.subr.bf16.mxu0 %v1354_v46 }
 0x13c   :  { %1016 = vmatmul.mubr.bf16.vlgmr.msra.gmra.mrb[12].mxu1 %v1519_v22 }
 0x13d   :  { %916 = vmatpush1.bf16.msra.mxu0 %v1352_v47 }
 0x13e   :  { %917 = vmatprep.subr.bf16.mxu0 %v1357_v48 }
 0x141   :  { %918 = vmatpush1.bf16.msra.mxu0 %v1355_v49 }
 0x142   :  { %919 = vmatprep.subr.bf16.mxu0 %v1360_v50 }
 0x145   :  { %920 = vmatpush1.bf16.msra.mxu0 %v1358_v51 }
 0x146   :  { %921 = vmatprep.subr.bf16.mxu0 %v1363_v52 }
 0x149   :  { %922 = vmatpush1.bf16.msra.mxu0 %v1361_v53 }
 0x14a   :  { %923 = vmatprep.subr.bf16.mxu0 %v1366_v54 }
 0x14d   :  { %924 = vmatpush1.bf16.msra.mxu0 %v1364_v55 }
 0x14e   :  { %925 = vmatprep.subr.bf16.mxu0 %v1369_v56 }
 0x151   :  { %926 = vmatpush1.bf16.msra.mxu0 %v1367_v57 }
 0x152   :  { %927 = vmatprep.subr.bf16.mxu0 %v1372_v58 }
 0x155   :  { %928 = vmatpush1.bf16.msra.mxu0 %v1370_v59 }
 0x156   :  { %929 = vmatprep.subr.bf16.mxu0 %v1375_v60 }
 0x159   :  { %930 = vmatpush1.bf16.msra.mxu0 %v1373_v61 }
 0x15c   :  { %932 = vmatmul.mubr.bf16.vlgmr.msra.gmra.mrb[0].mxu0 %v1519_v22 }
 0x1ef   :  { %v1193_v62 = vpop.f32.mrb[8].mxu1 }
 0x1f0   :  { %v1194_v63 = vpop.f32.mrb[9].mxu1 }
 0x1f1   :  { %v1195_v0 = vadd.f32 %v1194_v63, %v1193_v62  ;;  %v1196_v1 = vpop.f32.mrb[10].mxu1 }
 0x1f2   :  { %v1197_v2 = vpop.f32.mrb[11].mxu1 }
 0x1f3   :  { %v1198_v3 = vadd.f32 %v1197_v2, %v1196_v1 }
 0x20f   :  { %v1215_v4 = vpop.f32.mrb[12].mxu1 }
 0x210   :  { %v1216_v5 = vpop.f32.mrb[13].mxu1 }
 0x211   :  { %v1217_v6 = vadd.f32 %v1216_v5, %v1215_v4  ;;  %v1218_v7 = vpop.f32.mrb[14].mxu1 }
 0x212   :  { %v1219_v8 = vpop.f32.mrb[15].mxu1 }
 0x213   :  { %v1018_v9 = vadd.f32 %v1217_v6, %v1195_v0  ;;  %v1220_v10 = vadd.f32 %v1219_v8, %v1218_v7 }
 0x215   :  { %v1021_v11 = vadd.f32 %v1220_v10, %v1198_v3  ;;  %v1026_v23 = vmax.f32 %v1018_v9, 0.0 }
 0x217   :  { %v1029_v30 = vmax.f32 %v1021_v11, 0.0  ;;  %v1049_v35 = vmul.f32 %v1043_v26, %v1026_v23 }
 0x219   :  { %v1052_v38 = vmul.f32 %v1043_v26, %v1029_v30 }
 0x22f   :  { %v933_v19 = vpop.f32.mrb[0].mxu0 }
 0x230   :  { %v1024_v21 = vmax.f32 %v933_v19, 0.0  ;;  %v935_v22 = vpop.f32.mrb[1].mxu0 }
 0x231   :  { %v1025_v24 = vmax.f32 %v935_v22, 0.0  ;;  %v937_v25 = vpop.f32.mrb[2].mxu0 }
 0x232   :  { %v1047_v27 = vmul.f32 %v1035_v18, %v1024_v21  ;;  %v1027_v28 = vmax.f32 %v937_v25, 0.0  ;;  %v939_v29 = vpop.f32.mrb[3].mxu0 }
 0x233   :  { %v1048_v31 = vmul.f32 %v1039_v20, %v1025_v24  ;;  %v1028_v32 = vmax.f32 %v939_v29, 0.0 }
 0x234   :  { %v1050_v33 = vmul.f32 %v1035_v18, %v1027_v28 }
 0x235   :  { %v1051_v34 = vmul.f32 %v1039_v20, %v1028_v32  ;;  %v1053_v36 = vadd.f32 %v1048_v31, %v1047_v27 }
 0x237   :  { %v1054_v37 = vadd.f32 %v1053_v36, %v1049_v35  ;;  %v1057_v39 = vadd.f32 %v1051_v34, %v1050_v33 }
 0x239   :  { %1055 = vadd.xlane.f32.xlu0 %v1054_v37  ;;  %v1058_v40 = vadd.f32 %v1057_v39, %v1052_v38 }
 0x23d   :  { %1059 = vadd.xlane.f32.xlu0 %v1058_v40 }
 0x2c6   :  { %v1056_v41 = vpop.xlane.xlu0 %1055 }
 0x2c7   :  { %1062 = vst.msk [vmem:[%s1536_s4] sm:$0xff] %vm1061_vm1, %v1056_v41 }
 0x2ca   :  { %v1060_v42 = vpop.xlane.xlu0 %1059 }
 0x2cb   :  { %1063 = vst.msk [vmem:[%s1536_s4 + $0x8] sm:$0xff] %vm1061_vm1, %v1060_v42 }
 0x2cc   :  { %1068 = vsyncpa [#allocation3], 1 }
 0x2cd   :  { %1069 = vsyncpa [#allocation5], 1 }

</bundles_post_ra>
